<compile_context>
chip_gen: v5e
topology: v5e:2x2
jax: 0.10.0
libtpu: 0.0.40
codegen_flags: <defaults>
</compile_context>

<pallas_src>
import numpy as np
import jax
import jax.numpy as jnp
from jax.experimental import pallas as pl
from jax.experimental.pallas import tpu as pltpu

BN_EPS = 1e-5
NEG_SLOPE = 0.1


def _make_kernel(N, H, W, C):
    NHW = N * H * W
    inv_nhw = 1.0 / NHW
    # tap offsets, dy-major / dx-minor — must match weight & mask packing
    taps = [(dy, dx) for dy in (-1, 0, 1) for dx in (-1, 0, 1)]

    def kernel(x_ref, masks_ref, g1_ref, b1_ref, w1_ref, cb1_ref,
               g2_ref, b2_ref, w2_ref, cb2_ref, o_ref):
        x = x_ref[...]                                   # (C, NHW), lane-dense f32

        def bn_lrelu(v, g_ref, b_ref):
            # single-pass training-mode BN: var = E[x^2] - mean^2 (biased)
            s = jnp.sum(v, axis=1, keepdims=True)
            ss = jnp.sum(v * v, axis=1, keepdims=True)
            mean = s * inv_nhw
            var = ss * inv_nhw - mean * mean
            scale = g_ref[...] * jax.lax.rsqrt(var + BN_EPS)
            shift = b_ref[...] - mean * scale
            y = v * scale + shift
            return jnp.where(y > 0, y, NEG_SLOPE * y)    # LeakyReLU(0.1)

        def conv3x3(v, w_ref, cb_ref):
            # im2col via lane rotations + boundary masks, one fused K=9*C matmul
            cols = []
            for t, (dy, dx) in enumerate(taps):
                d = dy * W + dx
                shifted = v if d == 0 else pltpu.roll(v, shift=(-d) % NHW, axis=1)
                cols.append(shifted * masks_ref[t])      # (C, NHW)
            patches = jnp.concatenate(cols, axis=0)      # (9*C, NHW)
            out = jnp.dot(w_ref[...], patches,
                          preferred_element_type=jnp.float32)  # (C, NHW)
            return out + cb_ref[...]

        h = bn_lrelu(x, g1_ref, b1_ref)
        h = conv3x3(h, w1_ref, cb1_ref)
        h = bn_lrelu(h, g2_ref, b2_ref)
        h = conv3x3(h, w2_ref, cb2_ref)
        o_ref[...] = h + x                               # residual add

    return kernel


def residual_layer_2d(x_nchw, params):
    g1, b1, w1, cb1, g2, b2, w2, cb2 = params
    N, C, H, W = x_nchw.shape
    NHW = N * H * W

    # NCHW -> (C, N*H*W): channels on sublanes, flattened spatial on lanes
    x = jnp.transpose(x_nchw.astype(jnp.float32), (1, 0, 2, 3)).reshape(C, NHW)

    # torch conv weight (Cout, Cin, 3, 3) -> (Cout, 9*Cin), tap-major columns
    def pack_w(w):
        return jnp.transpose(w.astype(jnp.float32), (0, 2, 3, 1)).reshape(C, 9 * C)

    # zero-padding boundary masks per tap (static; computed host-side)
    f = np.arange(NHW)
    xi = f % W
    yi = (f // W) % H
    masks_np = np.stack([
        ((yi + dy >= 0) & (yi + dy < H) & (xi + dx >= 0) & (xi + dx < W))
        for dy in (-1, 0, 1) for dx in (-1, 0, 1)
    ]).astype(np.float32).reshape(9, 1, NHW)
    masks = jnp.asarray(masks_np)

    col = lambda p: p.astype(jnp.float32).reshape(C, 1)
    vmem = pl.BlockSpec(memory_space=pltpu.MemorySpace.VMEM)

    out = pl.pallas_call(
        _make_kernel(N, H, W, C),
        out_shape=jax.ShapeDtypeStruct((C, NHW), jnp.float32),
        in_specs=[vmem] * 10,
        out_specs=vmem,
    )(x, masks,
      col(g1), col(b1), pack_w(w1), col(cb1),
      col(g2), col(b2), pack_w(w2), col(cb2))

    return jnp.transpose(out.reshape(C, N, H, W), (1, 0, 2, 3))  # -> NCHW


def reference(x_nchw, params):
    """Pure-JAX reference mirroring the PyTorch forward (training-mode BN)."""
    g1, b1, w1, cb1, g2, b2, w2, cb2 = params
    x = jnp.transpose(x_nchw, (0, 2, 3, 1)).astype(jnp.float32)

    def bn_lrelu(v, g, b):
        mean = v.mean(axis=(0, 1, 2), keepdims=True)
        var = ((v - mean) ** 2).mean(axis=(0, 1, 2), keepdims=True)
        y = (v - mean) / jnp.sqrt(var + BN_EPS) * g + b
        return jnp.where(y > 0, y, NEG_SLOPE * y)

    def conv(v, w, cb):
        w_hwio = jnp.transpose(w, (2, 3, 1, 0))
        out = jax.lax.conv_general_dilated(
            v, w_hwio, (1, 1), 'SAME',
            dimension_numbers=('NHWC', 'HWIO', 'NHWC'))
        return out + cb

    h = conv(bn_lrelu(x, g1, b1), w1, cb1)
    h = conv(bn_lrelu(h, g2, b2), w2, cb2)
    return jnp.transpose(h + x, (0, 3, 1, 2))


if __name__ == "__main__":
    N, C, H, W = 2, 8, 16, 16  # feature_dim = C = 8
    key = jax.random.PRNGKey(0)
    kx, kg1, kb1, kw1, kc1, kg2, kb2, kw2, kc2 = jax.random.split(key, 9)

    x = jax.random.normal(kx, (N, C, H, W), dtype=jnp.float32)
    params = (
        1.0 + 0.1 * jax.random.normal(kg1, (C,), dtype=jnp.float32),    # BN1 gamma
        0.1 * jax.random.normal(kb1, (C,), dtype=jnp.float32),          # BN1 beta
        0.1 * jax.random.normal(kw1, (C, C, 3, 3), dtype=jnp.float32),  # conv1 w
        0.1 * jax.random.normal(kc1, (C,), dtype=jnp.float32),          # conv1 b
        1.0 + 0.1 * jax.random.normal(kg2, (C,), dtype=jnp.float32),    # BN2 gamma
        0.1 * jax.random.normal(kb2, (C,), dtype=jnp.float32),          # BN2 beta
        0.1 * jax.random.normal(kw2, (C, C, 3, 3), dtype=jnp.float32),  # conv2 w
        0.1 * jax.random.normal(kc2, (C,), dtype=jnp.float32),          # conv2 b
    )

    out = jax.block_until_ready(residual_layer_2d(x, params))
    ref = jax.block_until_ready(reference(x, params))

    assert out.shape == (N, C, H, W)
    assert jnp.allclose(out, ref, rtol=1e-4, atol=1e-4), (
        f"max abs err {jnp.max(jnp.abs(out - ref))}")
    print("KERNEL_OK")
</pallas_src>

<mosaic_0001>
module attributes {stable_mosaic.version = 11 : i64} {
  func.func @kernel(%arg0: memref<8x512xf32, #tpu.memory_space<vmem>>, %arg1: memref<9x1x512xf32, #tpu.memory_space<vmem>>, %arg2: memref<8x1xf32, #tpu.memory_space<vmem>>, %arg3: memref<8x1xf32, #tpu.memory_space<vmem>>, %arg4: memref<8x72xf32, #tpu.memory_space<vmem>>, %arg5: memref<8x1xf32, #tpu.memory_space<vmem>>, %arg6: memref<8x1xf32, #tpu.memory_space<vmem>>, %arg7: memref<8x1xf32, #tpu.memory_space<vmem>>, %arg8: memref<8x72xf32, #tpu.memory_space<vmem>>, %arg9: memref<8x1xf32, #tpu.memory_space<vmem>>, %arg10: memref<8x512xf32, #tpu.memory_space<vmem>>) attributes {dimension_semantics = [], scalar_prefetch = 0 : i64, scratch_operands = 0 : i64, tpu.core_type = #tpu.core_type<tc>} {
    %c0 = arith.constant 0 : index
    %c0_0 = arith.constant 0 : index
    %0 = vector.load %arg0[%c0, %c0_0] : memref<8x512xf32, #tpu.memory_space<vmem>>, vector<8x512xf32>
    %cst = arith.constant dense<0.000000e+00> : vector<8xf32>
    %1 = vector.multi_reduction <add>, %0, %cst [1] : vector<8x512xf32> to vector<8xf32>
    %2 = vector.shape_cast %1 : vector<8xf32> to vector<8x1xf32>
    %3 = arith.mulf %0, %0 : vector<8x512xf32>
    %cst_1 = arith.constant dense<0.000000e+00> : vector<8xf32>
    %4 = vector.multi_reduction <add>, %3, %cst_1 [1] : vector<8x512xf32> to vector<8xf32>
    %5 = vector.shape_cast %4 : vector<8xf32> to vector<8x1xf32>
    %cst_2 = arith.constant 0.001953125 : f32
    %6 = vector.broadcast %cst_2 : f32 to vector<8x1xf32>
    %7 = arith.mulf %2, %6 : vector<8x1xf32>
    %cst_3 = arith.constant 0.001953125 : f32
    %8 = vector.broadcast %cst_3 : f32 to vector<8x1xf32>
    %9 = arith.mulf %5, %8 : vector<8x1xf32>
    %10 = arith.mulf %7, %7 : vector<8x1xf32>
    %11 = arith.subf %9, %10 : vector<8x1xf32>
    %c0_4 = arith.constant 0 : index
    %c0_5 = arith.constant 0 : index
    %12 = vector.load %arg2[%c0_4, %c0_5] : memref<8x1xf32, #tpu.memory_space<vmem>>, vector<8x1xf32>
    %cst_6 = arith.constant 9.99999974E-6 : f32
    %13 = vector.broadcast %cst_6 : f32 to vector<8x1xf32>
    %14 = arith.addf %11, %13 : vector<8x1xf32>
    %15 = math.rsqrt %14 : vector<8x1xf32>
    %16 = arith.mulf %12, %15 : vector<8x1xf32>
    %c0_7 = arith.constant 0 : index
    %c0_8 = arith.constant 0 : index
    %17 = vector.load %arg3[%c0_7, %c0_8] : memref<8x1xf32, #tpu.memory_space<vmem>>, vector<8x1xf32>
    %18 = arith.mulf %7, %16 : vector<8x1xf32>
    %19 = arith.subf %17, %18 : vector<8x1xf32>
    %20 = vector.broadcast %16 : vector<8x1xf32> to vector<8x512xf32>
    %21 = arith.mulf %0, %20 : vector<8x512xf32>
    %22 = vector.broadcast %19 : vector<8x1xf32> to vector<8x512xf32>
    %23 = arith.addf %21, %22 : vector<8x512xf32>
    %cst_9 = arith.constant 0.000000e+00 : f32
    %24 = vector.broadcast %cst_9 : f32 to vector<8x512xf32>
    %25 = arith.cmpf ogt, %23, %24 : vector<8x512xf32>
    %cst_10 = arith.constant 1.000000e-01 : f32
    %26 = vector.broadcast %cst_10 : f32 to vector<8x512xf32>
    %27 = arith.mulf %26, %23 : vector<8x512xf32>
    %28 = arith.select %25, %23, %27 : vector<8x512xi1>, vector<8x512xf32>
    %c17_i32 = arith.constant 17 : i32
    %29 = tpu.dynamic_rotate %28 by %c17_i32 dim 1 : vector<8x512xf32>, i32 -> vector<8x512xf32>
    %c0_11 = arith.constant 0 : index
    %c0_12 = arith.constant 0 : index
    %c0_13 = arith.constant 0 : index
    %30 = vector.load %arg1[%c0_11, %c0_12, %c0_13] : memref<9x1x512xf32, #tpu.memory_space<vmem>>, vector<1x1x512xf32>
    %31 = vector.shape_cast %30 : vector<1x1x512xf32> to vector<1x512xf32>
    %32 = vector.broadcast %31 : vector<1x512xf32> to vector<8x512xf32>
    %33 = arith.mulf %29, %32 : vector<8x512xf32>
    %c16_i32 = arith.constant 16 : i32
    %34 = tpu.dynamic_rotate %28 by %c16_i32 dim 1 : vector<8x512xf32>, i32 -> vector<8x512xf32>
    %c1 = arith.constant 1 : index
    %c0_14 = arith.constant 0 : index
    %c0_15 = arith.constant 0 : index
    %35 = vector.load %arg1[%c1, %c0_14, %c0_15] : memref<9x1x512xf32, #tpu.memory_space<vmem>>, vector<1x1x512xf32>
    %36 = vector.shape_cast %35 : vector<1x1x512xf32> to vector<1x512xf32>
    %37 = vector.broadcast %36 : vector<1x512xf32> to vector<8x512xf32>
    %38 = arith.mulf %34, %37 : vector<8x512xf32>
    %c15_i32 = arith.constant 15 : i32
    %39 = tpu.dynamic_rotate %28 by %c15_i32 dim 1 : vector<8x512xf32>, i32 -> vector<8x512xf32>
    %c2 = arith.constant 2 : index
    %c0_16 = arith.constant 0 : index
    %c0_17 = arith.constant 0 : index
    %40 = vector.load %arg1[%c2, %c0_16, %c0_17] : memref<9x1x512xf32, #tpu.memory_space<vmem>>, vector<1x1x512xf32>
    %41 = vector.shape_cast %40 : vector<1x1x512xf32> to vector<1x512xf32>
    %42 = vector.broadcast %41 : vector<1x512xf32> to vector<8x512xf32>
    %43 = arith.mulf %39, %42 : vector<8x512xf32>
    %c1_i32 = arith.constant 1 : i32
    %44 = tpu.dynamic_rotate %28 by %c1_i32 dim 1 : vector<8x512xf32>, i32 -> vector<8x512xf32>
    %c3 = arith.constant 3 : index
    %c0_18 = arith.constant 0 : index
    %c0_19 = arith.constant 0 : index
    %45 = vector.load %arg1[%c3, %c0_18, %c0_19] : memref<9x1x512xf32, #tpu.memory_space<vmem>>, vector<1x1x512xf32>
    %46 = vector.shape_cast %45 : vector<1x1x512xf32> to vector<1x512xf32>
    %47 = vector.broadcast %46 : vector<1x512xf32> to vector<8x512xf32>
    %48 = arith.mulf %44, %47 : vector<8x512xf32>
    %c4 = arith.constant 4 : index
    %c0_20 = arith.constant 0 : index
    %c0_21 = arith.constant 0 : index
    %49 = vector.load %arg1[%c4, %c0_20, %c0_21] : memref<9x1x512xf32, #tpu.memory_space<vmem>>, vector<1x1x512xf32>
    %50 = vector.shape_cast %49 : vector<1x1x512xf32> to vector<1x512xf32>
    %51 = vector.broadcast %50 : vector<1x512xf32> to vector<8x512xf32>
    %52 = arith.mulf %28, %51 : vector<8x512xf32>
    %c511_i32 = arith.constant 511 : i32
    %53 = tpu.dynamic_rotate %28 by %c511_i32 dim 1 : vector<8x512xf32>, i32 -> vector<8x512xf32>
    %c5 = arith.constant 5 : index
    %c0_22 = arith.constant 0 : index
    %c0_23 = arith.constant 0 : index
    %54 = vector.load %arg1[%c5, %c0_22, %c0_23] : memref<9x1x512xf32, #tpu.memory_space<vmem>>, vector<1x1x512xf32>
    %55 = vector.shape_cast %54 : vector<1x1x512xf32> to vector<1x512xf32>
    %56 = vector.broadcast %55 : vector<1x512xf32> to vector<8x512xf32>
    %57 = arith.mulf %53, %56 : vector<8x512xf32>
    %c497_i32 = arith.constant 497 : i32
    %58 = tpu.dynamic_rotate %28 by %c497_i32 dim 1 : vector<8x512xf32>, i32 -> vector<8x512xf32>
    %c6 = arith.constant 6 : index
    %c0_24 = arith.constant 0 : index
    %c0_25 = arith.constant 0 : index
    %59 = vector.load %arg1[%c6, %c0_24, %c0_25] : memref<9x1x512xf32, #tpu.memory_space<vmem>>, vector<1x1x512xf32>
    %60 = vector.shape_cast %59 : vector<1x1x512xf32> to vector<1x512xf32>
    %61 = vector.broadcast %60 : vector<1x512xf32> to vector<8x512xf32>
    %62 = arith.mulf %58, %61 : vector<8x512xf32>
    %c496_i32 = arith.constant 496 : i32
    %63 = tpu.dynamic_rotate %28 by %c496_i32 dim 1 : vector<8x512xf32>, i32 -> vector<8x512xf32>
    %c7 = arith.constant 7 : index
    %c0_26 = arith.constant 0 : index
    %c0_27 = arith.constant 0 : index
    %64 = vector.load %arg1[%c7, %c0_26, %c0_27] : memref<9x1x512xf32, #tpu.memory_space<vmem>>, vector<1x1x512xf32>
    %65 = vector.shape_cast %64 : vector<1x1x512xf32> to vector<1x512xf32>
    %66 = vector.broadcast %65 : vector<1x512xf32> to vector<8x512xf32>
    %67 = arith.mulf %63, %66 : vector<8x512xf32>
    %c495_i32 = arith.constant 495 : i32
    %68 = tpu.dynamic_rotate %28 by %c495_i32 dim 1 : vector<8x512xf32>, i32 -> vector<8x512xf32>
    %c8 = arith.constant 8 : index
    %c0_28 = arith.constant 0 : index
    %c0_29 = arith.constant 0 : index
    %69 = vector.load %arg1[%c8, %c0_28, %c0_29] : memref<9x1x512xf32, #tpu.memory_space<vmem>>, vector<1x1x512xf32>
    %70 = vector.shape_cast %69 : vector<1x1x512xf32> to vector<1x512xf32>
    %71 = vector.broadcast %70 : vector<1x512xf32> to vector<8x512xf32>
    %72 = arith.mulf %68, %71 : vector<8x512xf32>
    %73 = tpu.concatenate %33, %38, %43, %48, %52, %57, %62, %67, %72 in 0 : vector<8x512xf32>, vector<8x512xf32>, vector<8x512xf32>, vector<8x512xf32>, vector<8x512xf32>, vector<8x512xf32>, vector<8x512xf32>, vector<8x512xf32>, vector<8x512xf32> -> vector<72x512xf32>
    %c0_30 = arith.constant 0 : index
    %c0_31 = arith.constant 0 : index
    %74 = vector.load %arg4[%c0_30, %c0_31] : memref<8x72xf32, #tpu.memory_space<vmem>>, vector<8x72xf32>
    %cst_32 = arith.constant dense<0.000000e+00> : vector<8x512xf32>
    %75 = tpu.matmul %74, %73, %cst_32 {dimension_numbers = #tpu.dot_dimension_numbers<[1], [0], [0], [1], [0, 0, 1, 1], [], []>} : vector<8x72xf32>, vector<72x512xf32>, vector<8x512xf32> -> vector<8x512xf32>
    %c0_33 = arith.constant 0 : index
    %c0_34 = arith.constant 0 : index
    %76 = vector.load %arg5[%c0_33, %c0_34] : memref<8x1xf32, #tpu.memory_space<vmem>>, vector<8x1xf32>
    %77 = vector.broadcast %76 : vector<8x1xf32> to vector<8x512xf32>
    %78 = arith.addf %75, %77 : vector<8x512xf32>
    %cst_35 = arith.constant dense<0.000000e+00> : vector<8xf32>
    %79 = vector.multi_reduction <add>, %78, %cst_35 [1] : vector<8x512xf32> to vector<8xf32>
    %80 = vector.shape_cast %79 : vector<8xf32> to vector<8x1xf32>
    %81 = arith.mulf %78, %78 : vector<8x512xf32>
    %cst_36 = arith.constant dense<0.000000e+00> : vector<8xf32>
    %82 = vector.multi_reduction <add>, %81, %cst_36 [1] : vector<8x512xf32> to vector<8xf32>
    %83 = vector.shape_cast %82 : vector<8xf32> to vector<8x1xf32>
    %cst_37 = arith.constant 0.001953125 : f32
    %84 = vector.broadcast %cst_37 : f32 to vector<8x1xf32>
    %85 = arith.mulf %80, %84 : vector<8x1xf32>
    %cst_38 = arith.constant 0.001953125 : f32
    %86 = vector.broadcast %cst_38 : f32 to vector<8x1xf32>
    %87 = arith.mulf %83, %86 : vector<8x1xf32>
    %88 = arith.mulf %85, %85 : vector<8x1xf32>
    %89 = arith.subf %87, %88 : vector<8x1xf32>
    %c0_39 = arith.constant 0 : index
    %c0_40 = arith.constant 0 : index
    %90 = vector.load %arg6[%c0_39, %c0_40] : memref<8x1xf32, #tpu.memory_space<vmem>>, vector<8x1xf32>
    %cst_41 = arith.constant 9.99999974E-6 : f32
    %91 = vector.broadcast %cst_41 : f32 to vector<8x1xf32>
    %92 = arith.addf %89, %91 : vector<8x1xf32>
    %93 = math.rsqrt %92 : vector<8x1xf32>
    %94 = arith.mulf %90, %93 : vector<8x1xf32>
    %c0_42 = arith.constant 0 : index
    %c0_43 = arith.constant 0 : index
    %95 = vector.load %arg7[%c0_42, %c0_43] : memref<8x1xf32, #tpu.memory_space<vmem>>, vector<8x1xf32>
    %96 = arith.mulf %85, %94 : vector<8x1xf32>
    %97 = arith.subf %95, %96 : vector<8x1xf32>
    %98 = vector.broadcast %94 : vector<8x1xf32> to vector<8x512xf32>
    %99 = arith.mulf %78, %98 : vector<8x512xf32>
    %100 = vector.broadcast %97 : vector<8x1xf32> to vector<8x512xf32>
    %101 = arith.addf %99, %100 : vector<8x512xf32>
    %cst_44 = arith.constant 0.000000e+00 : f32
    %102 = vector.broadcast %cst_44 : f32 to vector<8x512xf32>
    %103 = arith.cmpf ogt, %101, %102 : vector<8x512xf32>
    %cst_45 = arith.constant 1.000000e-01 : f32
    %104 = vector.broadcast %cst_45 : f32 to vector<8x512xf32>
    %105 = arith.mulf %104, %101 : vector<8x512xf32>
    %106 = arith.select %103, %101, %105 : vector<8x512xi1>, vector<8x512xf32>
    %c17_i32_46 = arith.constant 17 : i32
    %107 = tpu.dynamic_rotate %106 by %c17_i32_46 dim 1 : vector<8x512xf32>, i32 -> vector<8x512xf32>
    %c0_47 = arith.constant 0 : index
    %c0_48 = arith.constant 0 : index
    %c0_49 = arith.constant 0 : index
    %108 = vector.load %arg1[%c0_47, %c0_48, %c0_49] : memref<9x1x512xf32, #tpu.memory_space<vmem>>, vector<1x1x512xf32>
    %109 = vector.shape_cast %108 : vector<1x1x512xf32> to vector<1x512xf32>
    %110 = vector.broadcast %109 : vector<1x512xf32> to vector<8x512xf32>
    %111 = arith.mulf %107, %110 : vector<8x512xf32>
    %c16_i32_50 = arith.constant 16 : i32
    %112 = tpu.dynamic_rotate %106 by %c16_i32_50 dim 1 : vector<8x512xf32>, i32 -> vector<8x512xf32>
    %c1_51 = arith.constant 1 : index
    %c0_52 = arith.constant 0 : index
    %c0_53 = arith.constant 0 : index
    %113 = vector.load %arg1[%c1_51, %c0_52, %c0_53] : memref<9x1x512xf32, #tpu.memory_space<vmem>>, vector<1x1x512xf32>
    %114 = vector.shape_cast %113 : vector<1x1x512xf32> to vector<1x512xf32>
    %115 = vector.broadcast %114 : vector<1x512xf32> to vector<8x512xf32>
    %116 = arith.mulf %112, %115 : vector<8x512xf32>
    %c15_i32_54 = arith.constant 15 : i32
    %117 = tpu.dynamic_rotate %106 by %c15_i32_54 dim 1 : vector<8x512xf32>, i32 -> vector<8x512xf32>
    %c2_55 = arith.constant 2 : index
    %c0_56 = arith.constant 0 : index
    %c0_57 = arith.constant 0 : index
    %118 = vector.load %arg1[%c2_55, %c0_56, %c0_57] : memref<9x1x512xf32, #tpu.memory_space<vmem>>, vector<1x1x512xf32>
    %119 = vector.shape_cast %118 : vector<1x1x512xf32> to vector<1x512xf32>
    %120 = vector.broadcast %119 : vector<1x512xf32> to vector<8x512xf32>
    %121 = arith.mulf %117, %120 : vector<8x512xf32>
    %c1_i32_58 = arith.constant 1 : i32
    %122 = tpu.dynamic_rotate %106 by %c1_i32_58 dim 1 : vector<8x512xf32>, i32 -> vector<8x512xf32>
    %c3_59 = arith.constant 3 : index
    %c0_60 = arith.constant 0 : index
    %c0_61 = arith.constant 0 : index
    %123 = vector.load %arg1[%c3_59, %c0_60, %c0_61] : memref<9x1x512xf32, #tpu.memory_space<vmem>>, vector<1x1x512xf32>
    %124 = vector.shape_cast %123 : vector<1x1x512xf32> to vector<1x512xf32>
    %125 = vector.broadcast %124 : vector<1x512xf32> to vector<8x512xf32>
    %126 = arith.mulf %122, %125 : vector<8x512xf32>
    %c4_62 = arith.constant 4 : index
    %c0_63 = arith.constant 0 : index
    %c0_64 = arith.constant 0 : index
    %127 = vector.load %arg1[%c4_62, %c0_63, %c0_64] : memref<9x1x512xf32, #tpu.memory_space<vmem>>, vector<1x1x512xf32>
    %128 = vector.shape_cast %127 : vector<1x1x512xf32> to vector<1x512xf32>
    %129 = vector.broadcast %128 : vector<1x512xf32> to vector<8x512xf32>
    %130 = arith.mulf %106, %129 : vector<8x512xf32>
    %c511_i32_65 = arith.constant 511 : i32
    %131 = tpu.dynamic_rotate %106 by %c511_i32_65 dim 1 : vector<8x512xf32>, i32 -> vector<8x512xf32>
    %c5_66 = arith.constant 5 : index
    %c0_67 = arith.constant 0 : index
    %c0_68 = arith.constant 0 : index
    %132 = vector.load %arg1[%c5_66, %c0_67, %c0_68] : memref<9x1x512xf32, #tpu.memory_space<vmem>>, vector<1x1x512xf32>
    %133 = vector.shape_cast %132 : vector<1x1x512xf32> to vector<1x512xf32>
    %134 = vector.broadcast %133 : vector<1x512xf32> to vector<8x512xf32>
    %135 = arith.mulf %131, %134 : vector<8x512xf32>
    %c497_i32_69 = arith.constant 497 : i32
    %136 = tpu.dynamic_rotate %106 by %c497_i32_69 dim 1 : vector<8x512xf32>, i32 -> vector<8x512xf32>
    %c6_70 = arith.constant 6 : index
    %c0_71 = arith.constant 0 : index
    %c0_72 = arith.constant 0 : index
    %137 = vector.load %arg1[%c6_70, %c0_71, %c0_72] : memref<9x1x512xf32, #tpu.memory_space<vmem>>, vector<1x1x512xf32>
    %138 = vector.shape_cast %137 : vector<1x1x512xf32> to vector<1x512xf32>
    %139 = vector.broadcast %138 : vector<1x512xf32> to vector<8x512xf32>
    %140 = arith.mulf %136, %139 : vector<8x512xf32>
    %c496_i32_73 = arith.constant 496 : i32
    %141 = tpu.dynamic_rotate %106 by %c496_i32_73 dim 1 : vector<8x512xf32>, i32 -> vector<8x512xf32>
    %c7_74 = arith.constant 7 : index
    %c0_75 = arith.constant 0 : index
    %c0_76 = arith.constant 0 : index
    %142 = vector.load %arg1[%c7_74, %c0_75, %c0_76] : memref<9x1x512xf32, #tpu.memory_space<vmem>>, vector<1x1x512xf32>
    %143 = vector.shape_cast %142 : vector<1x1x512xf32> to vector<1x512xf32>
    %144 = vector.broadcast %143 : vector<1x512xf32> to vector<8x512xf32>
    %145 = arith.mulf %141, %144 : vector<8x512xf32>
    %c495_i32_77 = arith.constant 495 : i32
    %146 = tpu.dynamic_rotate %106 by %c495_i32_77 dim 1 : vector<8x512xf32>, i32 -> vector<8x512xf32>
    %c8_78 = arith.constant 8 : index
    %c0_79 = arith.constant 0 : index
    %c0_80 = arith.constant 0 : index
    %147 = vector.load %arg1[%c8_78, %c0_79, %c0_80] : memref<9x1x512xf32, #tpu.memory_space<vmem>>, vector<1x1x512xf32>
    %148 = vector.shape_cast %147 : vector<1x1x512xf32> to vector<1x512xf32>
    %149 = vector.broadcast %148 : vector<1x512xf32> to vector<8x512xf32>
    %150 = arith.mulf %146, %149 : vector<8x512xf32>
    %151 = tpu.concatenate %111, %116, %121, %126, %130, %135, %140, %145, %150 in 0 : vector<8x512xf32>, vector<8x512xf32>, vector<8x512xf32>, vector<8x512xf32>, vector<8x512xf32>, vector<8x512xf32>, vector<8x512xf32>, vector<8x512xf32>, vector<8x512xf32> -> vector<72x512xf32>
    %c0_81 = arith.constant 0 : index
    %c0_82 = arith.constant 0 : index
    %152 = vector.load %arg8[%c0_81, %c0_82] : memref<8x72xf32, #tpu.memory_space<vmem>>, vector<8x72xf32>
    %cst_83 = arith.constant dense<0.000000e+00> : vector<8x512xf32>
    %153 = tpu.matmul %152, %151, %cst_83 {dimension_numbers = #tpu.dot_dimension_numbers<[1], [0], [0], [1], [0, 0, 1, 1], [], []>} : vector<8x72xf32>, vector<72x512xf32>, vector<8x512xf32> -> vector<8x512xf32>
    %c0_84 = arith.constant 0 : index
    %c0_85 = arith.constant 0 : index
    %154 = vector.load %arg9[%c0_84, %c0_85] : memref<8x1xf32, #tpu.memory_space<vmem>>, vector<8x1xf32>
    %155 = vector.broadcast %154 : vector<8x1xf32> to vector<8x512xf32>
    %156 = arith.addf %153, %155 : vector<8x512xf32>
    %157 = arith.addf %156, %0 : vector<8x512xf32>
    %c0_86 = arith.constant 0 : index
    %c0_87 = arith.constant 0 : index
    %158 = vector.load %arg10[%c0_86, %c0_87] : memref<8x512xf32, #tpu.memory_space<vmem>>, vector<8x512xf32>
    tpu.vector_store %arg10[%c0_86, %c0_87], %157 {strides = array<i32>} : memref<8x512xf32, #tpu.memory_space<vmem>>, vector<8x512xf32>,
    return
  }
}

</mosaic_0001>

<bundles_post_ra>
// kernel: tpu_custom_call.1
= control target key start
LH: loop header
LB: loop body
LE: loop exit
PB: predicated region body
PF: predicated region fallthrough
CT: control target
= control target key end

     0   :  { %15 = vsyncpa [#allocation3], 0  ;;  %s1506_s0 = inlined_call_operand.hbm [shape: f32[8,512], index: 0, kind: input, shape index: {}]   ;;  %s1507_s1 = inlined_call_operand.hbm [shape: f32[9,1,512], index: 1, kind: input, shape index: {}]   ;;  %s1508_s2 = inlined_call_operand.vmem [shape: f32[8,1], index: 2, kind: input, shape index: {}]   ;;  %s1509_s3 = inlined_call_operand.vmem [shape: f32[8,1], index: 3, kind: input, shape index: {}]   ;;  %s1510_s4 = inlined_call_operand.vmem [shape: f32[8,72], index: 4, kind: input, shape index: {}]   ;;  %s1511_s5 = inlined_call_operand.vmem [shape: f32[8,1], index: 5, kind: input, shape index: {}]   ;;  %s1512_s6 = inlined_call_operand.vmem [shape: f32[8,1], index: 6, kind: input, shape index: {}]   ;;  %s1513_s7 = inlined_call_operand.vmem [shape: f32[8,1], index: 7, kind: input, shape index: {}]   ;;  %s1514_s8 = inlined_call_operand.vmem [shape: f32[8,72], index: 8, kind: input, shape index: {}]   ;;  %s1515_s9 = inlined_call_operand.vmem [shape: f32[8,1], index: 9, kind: input, shape index: {}]   ;;  %s1516_s10 = inlined_call_operand.hbm [shape: f32[8,512], index: 10, kind: output, shape index: {}]  }
   0x1   :  { %16 = vsyncpa [#allocation6], 0 }
   0x2   :  { %17 = vsyncpa [#allocation4], 0  ;;  %s23_s15 = sshll.u32 %s1506_s0, 4  ;;  %s888_s16 = smov [#allocation2]   ;;  %s24_s15 = int_to_ptr.hbm [resolvable:$true] %s23_s15 }
   0x3   :  { %s25_s17 = sshll.u32 %s888_s16, 4  ;;  %s33_s20 = sshll.u32 %s1507_s1, 4  ;;  %s26_s17 = int_to_ptr.vmem [resolvable:$true] %s25_s17  ;;  %s34_s20 = int_to_ptr.hbm [resolvable:$true] %s33_s20 }
   0x4   :  { %28 = dma.hbm_to_vmem [thread:$0]  %s24_s15, 512, %s26_s17, [#allocation3]  }
   0x5   :  { %s889_s21 = smov [#allocation5]   ;;  %s890_s23 = smov 64  }
   0x6   :  { %s35_s22 = sshll.u32 %s889_s21, 4  ;;  %s891_s24 = smov 4   ;;  %s36_s22 = int_to_ptr.vmem [resolvable:$true] %s35_s22 }
   0x7   :  { %41 = dma.hbm_to_vmem [thread:$0]  %s34_s20, 576, %s36_s22, [#allocation6], %s890_s23, %s890_s23, %s891_s24  }
   0x8   :  { %882 = dma.done.wait [#allocation3], 512  }
   0x9   :  { %883 = vsyncadd [#allocation3], 4294966784 }
   0xa   :  { %884 = dma.done.wait [#allocation6], 576  }
   0xb   :  { %885 = vsyncadd [#allocation6], 4294966720  ;;  %v66_v0 = vld [vmem:[#allocation2] sm:$0xff]  ;;  %v67_v1 = vld [vmem:[#allocation2 + $0x8] sm:$0xff]  ;;  %v892_v14 = vmov 0   ;;  %s895_s27 = smov 127   ;;  %v142_v52 = vlaneseq }
   0xc   :  { %v68_v2 = vld [vmem:[#allocation2 + $0x10] sm:$0xff]  ;;  %v70_v3 = vadd.f32 %v67_v1, %v66_v0  ;;  %v75_v4 = vmul.f32 %v66_v0, %v66_v0  ;;  %v76_v5 = vmul.f32 %v67_v1, %v67_v1  ;;  %v69_v6 = vld [vmem:[#allocation2 + $0x18] sm:$0xff]  ;;  %799 = vset.pattern.permute.xlu1 %v892_v14  ;;  %800 = vset.pattern.permute.xlu2 %v892_v14  ;;  %v88_v27 = vld [vmem:[%s1508_s2] sm:$0xff]  ;;  %s893_s2 = smov 112   ;;  %s896_s28 = smov 113   ;;  %vm381_vm15 = vcmask 588800  }
   0xd   :  { %v77_v8 = vmul.f32 %v68_v2, %v68_v2  ;;  %v78_v11 = vmul.f32 %v69_v6, %v69_v6  ;;  %801 = vset.pattern.permute.xlu0 %v892_v14  ;;  %v101_v32 = vld [vmem:[%s1509_s3] sm:$0xff]  ;;  %s894_s3 = smov 111   ;;  %s897_s29 = smov 1   ;;  %v1041_v54 = vand.u32 127, %v142_v52 }
   0xe   :  { %v71_v7 = vadd.f32 %v70_v3, %v68_v2  ;;  %v79_v9 = vadd.f32 %v76_v5, %v75_v4  ;;  %s898_s30 = smov 15   ;;  %s899_s11 = smov 16   ;;  %v1043_v55 = vld [vmem:[#allocation5 + $0x20] sm:$0xf] }
   0xf   :  { %s900_s12 = smov 17   ;;  %vm354_vm7 = vcmp.lt.s32.totalorder %v1041_v54, 111  ;;  %v364_v56 = vperm.slane %v1043_v55, 2  ;;  %v365_v60 = vperm.slane %v1043_v55, 3  ;;  %vm326_vm8 = vcmp.lt.s32.totalorder %v1041_v54, 112  ;;  %s766_s23 = sshll.u32 %s1516_s10, 4  ;;  %s767_s23 = int_to_ptr.hbm [resolvable:$true] %s766_s23 }
  0x10   :  { %v72_v10 = vadd.f32 %v71_v7, %v69_v6  ;;  %v80_v12 = vadd.f32 %v79_v9, %v77_v8  ;;  %v1064_v7 = vld [vmem:[#allocation5 + $0x18] sm:$0xf]  ;;  %v362_v8 = vperm.slane %v1043_v55, 0  ;;  %v363_v9 = vperm.slane %v1043_v55, 1 }
  0x11   :  { %vm298_vm9 = vcmp.lt.s32.totalorder %v1041_v54, 113  ;;  %vm270_vm10 = vcmp.lt.s32.totalorder %v1041_v54, 127  ;;  %vm227_vm11 = vcmp.lt.s32.totalorder %v1041_v54, 1  ;;  %vm199_vm12 = vcmp.lt.s32.totalorder %v1041_v54, 15 }
  0x12   :  { %73 = vadd.xlane.f32.xlu0 %v72_v10  ;;  %v81_v13 = vadd.f32 %v80_v12, %v78_v11  ;;  %v308_v10 = vperm.slane %v1064_v7, 2  ;;  %vm171_vm13 = vcmp.lt.s32.totalorder %v1041_v54, 16  ;;  %vm144_vm14 = vcmp.lt.s32.totalorder %v1041_v54, 17 }
  0x1a   :  { %82 = vadd.xlane.f32.xlu0 %v81_v13 }
  0x85   :  { %v74_v15 = vpop.xlane.xlu0 %73 }
  0x86   :  { %v84_v16 = vmul.f32 0.001953125, %v74_v15 }
  0x88   :  { %v86_v18 = vmul.f32 %v84_v16, %v84_v16 }
  0x8d   :  { %v83_v17 = vpop.xlane.xlu0 %82 }
  0x8e   :  { %v85_v19 = vmul.f32 0.001953125, %v83_v17 }
  0x90   :  { %v87_v20 = vsub.f32 %v85_v19, %v86_v18 }
  0x92   :  { %v89_v21 = vadd.f32 1e-05, %v87_v20 }
  0x94   :  { %802 = vrsqrt.f32 %v89_v21  ;;  %vm96_vm1 = vweird.f32 %v89_v21 }
  0x9a   :  { %v803_v22 = vpop.eup %802 }
  0x9b   :  { %v91_v23 = vmul.f32 %v803_v22, %v89_v21  ;;  %vm97_vm0 = vweird.f32 %v803_v22 }
  0x9c   :  { %vm98_vm2 = vmor %vm96_vm1, %vm97_vm0 }
  0x9d   :  { %v92_v24 = vmul.f32 %v803_v22, %v91_v23 }
  0x9f   :  { %v93_v25 = vmul.f32 0.5, %v92_v24 }
  0xa1   :  { %v94_v26 = vsub.f32 1.5, %v93_v25 }
  0xa3   :  { %v95_v28 = vmul.f32 %v803_v22, %v94_v26 }
  0xa5   :  { %v99_v29 = vsel %vm98_vm2, %v803_v22, %v95_v28 }
  0xa6   :  { %v100_v30 = vmul.f32 %v99_v29, %v88_v27  ;;  %v309_v27 = vperm.slane %v1064_v7, 3 }
  0xa8   :  { %106 = vperm.xlu1 %799, %v100_v30   ;;  %v102_v31 = vmul.f32 %v100_v30, %v84_v16 }
  0xaa   :  { %v103_v33 = vsub.f32 %v101_v32, %v102_v31 }
  0xb0   :  { %115 = vperm.xlu1 %799, %v103_v33  }
 0x11a   :  { %v107_v34 = vpop.permute.xlu1 %106 }
 0x11b   :  { %v111_v35 = vmul.f32 %v107_v34, %v68_v2  ;;  %v112_v36 = vmul.f32 %v107_v34, %v69_v6  ;;  %v109_v44 = vmul.f32 %v107_v34, %v66_v0  ;;  %v110_v45 = vmul.f32 %v107_v34, %v67_v1  ;;  %v1056_v0 = vld [vmem:[#allocation5 + $0x1c] sm:$0xf]  ;;  %v1100_v34 = vld [vmem:[#allocation5 + $0x14] sm:$0xf] }
 0x11c   :  { %v336_v1 = vperm.slane %v1056_v0, 2  ;;  %v335_v20 = vperm.slane %v1056_v0, 1  ;;  %v334_v21 = vperm.slane %v1056_v0, 0  ;;  %v337_v22 = vperm.slane %v1056_v0, 3 }
 0x122   :  { %v116_v37 = vpop.permute.xlu1 %115 }
 0x123   :  { %v120_v38 = vadd.f32 %v116_v37, %v111_v35  ;;  %v121_v39 = vadd.f32 %v116_v37, %v112_v36  ;;  %v118_v46 = vadd.f32 %v116_v37, %v109_v44  ;;  %v119_v47 = vadd.f32 %v116_v37, %v110_v45 }
 0x124   :  { %v306_v36 = vperm.slane %v1064_v7, 0  ;;  %v307_v37 = vperm.slane %v1064_v7, 1 }
 0x125   :  { %vm124_vm3 = vcmp.gt.f32.partialorder %v120_v38, 0.0  ;;  %vm125_vm4 = vcmp.gt.f32.partialorder %v121_v39, 0.0  ;;  %v128_v40 = vmul.f32 0.1, %v120_v38  ;;  %v129_v41 = vmul.f32 0.1, %v121_v39 }
 0x126   :  { %v126_v48 = vmul.f32 0.1, %v118_v46  ;;  %v127_v49 = vmul.f32 0.1, %v119_v47  ;;  %vm122_vm5 = vcmp.gt.f32.partialorder %v118_v46, 0.0  ;;  %vm123_vm6 = vcmp.gt.f32.partialorder %v119_v47, 0.0 }
 0x127   :  { %v969_v42 = vsel %vm124_vm3, %v120_v38, %v128_v40  ;;  %v971_v43 = vsel %vm125_vm4, %v121_v39, %v129_v41  ;;  %v1106_v38 = vld [vmem:[#allocation5 + $0x10] sm:$0xf]  ;;  %v280_v39 = vperm.slane %v1100_v34, 2 }
 0x128   :  { %322 = vrot.lane.b32.xlu0 %v969_v42, %s893_s2  ;;  %350 = vrot.lane.b32.xlu2 %v969_v42, %s894_s3  ;;  %v985_v50 = vsel %vm122_vm5, %v118_v46, %v126_v48  ;;  %v987_v51 = vsel %vm123_vm6, %v119_v47, %v127_v49  ;;  %v252_v47 = vperm.slane %v1106_v38, 2 }
 0x129   :  { %324 = vrot.lane.b32.xlu1 %v971_v43, %s893_s2 }
 0x130   :  { %266 = vrot.lane.b32.xlu0 %v969_v42, %s895_s27  ;;  %352 = vrot.lane.b32.xlu2 %v971_v43, %s894_s3 }
 0x131   :  { %294 = vrot.lane.b32.xlu1 %v969_v42, %s896_s28 }
 0x138   :  { %320 = vrot.lane.b32.xlu0 %v987_v51, %s893_s2  ;;  %346 = vrot.lane.b32.xlu2 %v985_v50, %s894_s3 }
 0x139   :  { %318 = vrot.lane.b32.xlu1 %v985_v50, %s893_s2 }
 0x140   :  { %221 = vrot.lane.b32.xlu0 %v987_v51, %s897_s29  ;;  %296 = vrot.lane.b32.xlu2 %v971_v43, %s896_s28 }
 0x141   :  { %268 = vrot.lane.b32.xlu1 %v971_v43, %s895_s27 }
 0x148   :  { %193 = vrot.lane.b32.xlu0 %v987_v51, %s898_s30  ;;  %348 = vrot.lane.b32.xlu2 %v987_v51, %s894_s3 }
 0x149   :  { %262 = vrot.lane.b32.xlu1 %v985_v50, %s895_s27 }
 0x150   :  { %165 = vrot.lane.b32.xlu0 %v987_v51, %s899_s11  ;;  %290 = vrot.lane.b32.xlu2 %v985_v50, %s896_s28 }
 0x151   :  { %223 = vrot.lane.b32.xlu1 %v969_v42, %s897_s29 }
 0x158   :  { %219 = vrot.lane.b32.xlu0 %v985_v50, %s897_s29  ;;  %292 = vrot.lane.b32.xlu2 %v987_v51, %s896_s28 }
 0x159   :  { %195 = vrot.lane.b32.xlu1 %v969_v42, %s898_s30 }
 0x160   :  { %169 = vrot.lane.b32.xlu0 %v971_v43, %s899_s11  ;;  %264 = vrot.lane.b32.xlu2 %v987_v51, %s895_s27 }
 0x161   :  { %167 = vrot.lane.b32.xlu1 %v969_v42, %s899_s11 }
 0x168   :  { %163 = vrot.lane.b32.xlu0 %v985_v50, %s899_s11  ;;  %225 = vrot.lane.b32.xlu2 %v971_v43, %s897_s29 }
 0x169   :  { %136 = vrot.lane.b32.xlu1 %v987_v51, %s900_s12 }
 0x170   :  { %197 = vrot.lane.b32.xlu2 %v971_v43, %s898_s30 }
 0x171   :  { %191 = vrot.lane.b32.xlu1 %v985_v50, %s898_s30 }
 0x178   :  { %138 = vrot.lane.b32.xlu2 %v969_v42, %s900_s12 }
 0x179   :  { %134 = vrot.lane.b32.xlu1 %v985_v50, %s900_s12 }
 0x180   :  { %140 = vrot.lane.b32.xlu2 %v971_v43, %s900_s12 }
 0x182   :  { %v351_v53 = vpop.permute.xlu2 %350 }
 0x18a   :  { %v353_v57 = vpop.permute.xlu2 %352 }
 0x18b   :  { %v355_v58 = vsel %vm354_vm7, %v351_v53, %v353_v57 }
 0x18c   :  { %v372_v59 = vmul.f32 %v364_v56, %v355_v58  ;;  %v279_v58 = vperm.slane %v1100_v34, 1 }
 0x18e   :  { %432 = vmatpush.msra.mxu2 %v372_v59  ;;  %v278_v59 = vperm.slane %v1100_v34, 0 }
 0x192   :  { %v347_v61 = vpop.permute.xlu2 %346 }
 0x193   :  { %v358_v62 = vsel %vm354_vm7, %v353_v57, %v347_v61  ;;  %v260_v57 = vmul.f32 %v252_v47, %v969_v42  ;;  %v253_v42 = vperm.slane %v1106_v38, 3 }
 0x194   :  { %v373_v63 = vmul.f32 %v365_v60, %v358_v62 }
 0x196   :  { %452 = vmatpush.msra.mxu3 %v373_v63 }
 0x19a   :  { %v323_v2 = vpop.permute.xlu0 %322  ;;  %v297_v3 = vpop.permute.xlu2 %296 }
 0x19b   :  { %v325_v4 = vpop.permute.xlu1 %324 }
 0x19c   :  { %v327_v5 = vsel %vm326_vm8, %v323_v2, %v325_v4 }
 0x19d   :  { %v344_v6 = vmul.f32 %v336_v1, %v327_v5  ;;  %v250_v5 = vperm.slane %v1106_v38, 0 }
 0x19f   :  { %433 = vmatpush.msra.mxu2 %v344_v6 }
 0x1a2   :  { %v267_v11 = vpop.permute.xlu0 %266  ;;  %v349_v12 = vpop.permute.xlu2 %348 }
 0x1a3   :  { %v295_v13 = vpop.permute.xlu1 %294  ;;  %v357_v14 = vsel %vm354_vm7, %v347_v61, %v349_v12  ;;  %v356_v15 = vsel %vm354_vm7, %v349_v12, %v351_v53  ;;  %v281_v61 = vperm.slane %v1100_v34, 3 }
 0x1a4   :  { %v299_v16 = vsel %vm298_vm9, %v295_v13, %v297_v3  ;;  %v370_v17 = vmul.f32 %v362_v8, %v357_v14  ;;  %v371_v18 = vmul.f32 %v363_v9, %v356_v15 }
 0x1a5   :  { %v316_v19 = vmul.f32 %v308_v10, %v299_v16  ;;  %v1149_v16 = vld [vmem:[#allocation5 + $0xc] sm:$0xf] }
 0x1a6   :  { %392 = vmatpush.msra.mxu0 %v370_v17  ;;  %412 = vmatpush.msra.mxu1 %v371_v18  ;;  %v258_v17 = vmul.f32 %v250_v5, %v985_v50  ;;  %v261_v18 = vmul.f32 %v253_v42, %v971_v43 }
 0x1a7   :  { %434 = vmatpush.msra.mxu2 %v316_v19  ;;  %v237_v19 = vperm.slane %v1149_v16, 2 }
 0x1aa   :  { %v321_v23 = vpop.permute.xlu0 %320  ;;  %v291_v24 = vpop.permute.xlu2 %290 }
 0x1ab   :  { %v328_v25 = vsel %vm326_vm8, %v321_v23, %v323_v2  ;;  %v319_v26 = vpop.permute.xlu1 %318  ;;  %v302_v30 = vsel %vm298_vm9, %v297_v3, %v291_v24  ;;  %v251_v2 = vperm.slane %v1106_v38, 1 }
 0x1ac   :  { %v329_v28 = vsel %vm326_vm8, %v319_v26, %v321_v23  ;;  %v330_v29 = vsel %vm326_vm8, %v325_v4, %v319_v26  ;;  %v343_v31 = vmul.f32 %v335_v20, %v328_v25  ;;  %v317_v35 = vmul.f32 %v309_v27, %v302_v30 }
 0x1ad   :  { %v342_v32 = vmul.f32 %v334_v21, %v329_v28  ;;  %v345_v33 = vmul.f32 %v337_v22, %v330_v29  ;;  %v1170_v29 = vld [vmem:[#allocation5 + $0x8] sm:$0xf]  ;;  %v235_v30 = vperm.slane %v1149_v16, 0 }
 0x1ae   :  { %413 = vmatpush.msra.mxu1 %v343_v31  ;;  %v236_v31 = vperm.slane %v1149_v16, 1 }
 0x1af   :  { %393 = vmatpush.msra.mxu0 %v342_v32  ;;  %453 = vmatpush.msra.mxu3 %v345_v33  ;;  %v209_v32 = vperm.slane %v1170_v29, 2  ;;  %v210_v33 = vperm.slane %v1170_v29, 3 }
 0x1b1   :  { %454 = vmatpush.msra.mxu3 %v317_v35 }
 0x1b2   :  { %v222_v40 = vpop.permute.xlu0 %221  ;;  %v293_v41 = vpop.permute.xlu2 %292 }
 0x1b3   :  { %v269_v44 = vpop.permute.xlu1 %268  ;;  %v300_v45 = vsel %vm298_vm9, %v293_v41, %v295_v13  ;;  %v301_v46 = vsel %vm298_vm9, %v291_v24, %v293_v41 }
 0x1b4   :  { %v271_v48 = vsel %vm270_vm10, %v267_v11, %v269_v44  ;;  %v314_v49 = vmul.f32 %v306_v36, %v301_v46  ;;  %v315_v52 = vmul.f32 %v307_v37, %v300_v45 }
 0x1b5   :  { %v288_v53 = vmul.f32 %v280_v39, %v271_v48 }
 0x1b6   :  { %394 = vmatpush.msra.mxu0 %v314_v49  ;;  %414 = vmatpush.msra.mxu1 %v315_v52 }
 0x1b7   :  { %435 = vmatpush.msra.mxu2 %v288_v53 }
 0x1b9   :  { %436 = vmatpush.msra.mxu2 %v260_v57 }
 0x1ba   :  { %v1129_v62 = vpop.permute.xlu0 %193  ;;  %v265_v63 = vpop.permute.xlu2 %264 }
 0x1bb   :  { %v263_v3 = vpop.permute.xlu1 %262  ;;  %v272_v4 = vsel %vm270_vm10, %v265_v63, %v267_v11  ;;  %v259_v11 = vmul.f32 %v251_v2, %v987_v51  ;;  %v238_v51 = vperm.slane %v1149_v16, 3 }
 0x1bc   :  { %v274_v6 = vsel %vm270_vm10, %v269_v44, %v263_v3  ;;  %v273_v12 = vsel %vm270_vm10, %v263_v3, %v265_v63  ;;  %v287_v13 = vmul.f32 %v279_v58, %v272_v4  ;;  %v1194_v63 = vld [vmem:[#allocation5 + $0x4] sm:$0xf] }
 0x1bd   :  { %v286_v14 = vmul.f32 %v278_v59, %v273_v12  ;;  %v289_v15 = vmul.f32 %v281_v61, %v274_v6  ;;  %v375_v3 = vld [vmem:[%s1511_s5] sm:$0xff]  ;;  %v181_v4 = vperm.slane %v1194_v63, 2  ;;  %v182_v6 = vperm.slane %v1194_v63, 3 }
 0x1be   :  { %415 = vmatpush.msra.mxu1 %v287_v13  ;;  %378 = vperm.xlu2 %800, %v375_v3  }
 0x1bf   :  { %395 = vmatpush.msra.mxu0 %v286_v14  ;;  %455 = vmatpush.msra.mxu3 %v289_v15 }
 0x1c0   :  { %416 = vmatpush.msra.mxu1 %v259_v11 }
 0x1c1   :  { %396 = vmatpush.msra.mxu0 %v258_v17  ;;  %456 = vmatpush.msra.mxu3 %v261_v18 }
 0x1c2   :  { %v1160_v23 = vpop.permute.xlu0 %165  ;;  %v226_v24 = vpop.permute.xlu2 %225 }
 0x1c3   :  { %v224_v25 = vpop.permute.xlu1 %223 }
 0x1c4   :  { %v229_v50 = vsel %vm227_vm11, %v222_v40, %v224_v25  ;;  %v228_v26 = vsel %vm227_vm11, %v224_v25, %v226_v24 }
 0x1c5   :  { %v245_v43 = vmul.f32 %v237_v19, %v229_v50  ;;  %v246_v28 = vmul.f32 %v238_v51, %v228_v26 }
 0x1c7   :  { %437 = vmatpush.msra.mxu2 %v245_v43  ;;  %457 = vmatpush.msra.mxu3 %v246_v28 }
 0x1ca   :  { %v220_v35 = vpop.permute.xlu0 %219  ;;  %v198_v41 = vpop.permute.xlu2 %197 }
 0x1cb   :  { %v230_v44 = vsel %vm227_vm11, %v220_v35, %v222_v40  ;;  %v231_v45 = vsel %vm227_vm11, %v226_v24, %v220_v35  ;;  %v196_v46 = vpop.permute.xlu1 %195  ;;  %v1211_v24 = vld [vmem:[#allocation5] sm:$0xf] }
 0x1cc   :  { %v201_v48 = vsel %vm199_vm12, %v1129_v62, %v196_v46  ;;  %v200_v49 = vsel %vm199_vm12, %v196_v46, %v198_v41  ;;  %v243_v52 = vmul.f32 %v235_v30, %v231_v45  ;;  %v244_v53 = vmul.f32 %v236_v31, %v230_v44  ;;  %v374_v45 = vld [vmem:[%s1510_s4] sm:$0xff] }
 0x1cd   :  { %v217_v40 = vmul.f32 %v209_v32, %v201_v48  ;;  %v218_v57 = vmul.f32 %v210_v33, %v200_v49  ;;  %v1521_v25 = vperm.slane %v1211_v24, 3  ;;  %v153_v50 = vperm.slane %v1211_v24, 2 }
 0x1ce   :  { %397 = vmatpush.msra.mxu0 %v243_v52  ;;  %417 = vmatpush.msra.mxu1 %v244_v53  ;;  %v1523_v49 = vperm.slane %v1170_v29, 0  ;;  %v1522_v52 = vperm.slane %v1170_v29, 1  ;;  %v1526_v16 = vperm.slane %v1211_v24, 3 }
 0x1cf   :  { %438 = vmatpush.msra.mxu2 %v217_v40  ;;  %458 = vmatpush.msra.mxu3 %v218_v57  ;;  %v1520_v40 = vperm.slane %v1194_v63, 0  ;;  %v1519_v57 = vperm.slane %v1194_v63, 1 }
 0x1d2   :  { %v170_v12 = vpop.permute.xlu0 %169  ;;  %v139_v13 = vpop.permute.xlu2 %138 }
 0x1d3   :  { %v168_v14 = vpop.permute.xlu1 %167 }
 0x1d4   :  { %v172_v15 = vsel %vm171_vm13, %v168_v14, %v170_v12  ;;  %v173_v11 = vsel %vm171_vm13, %v1160_v23, %v168_v14 }
 0x1d5   :  { %v189_v17 = vmul.f32 %v181_v4, %v173_v11  ;;  %v190_v18 = vmul.f32 %v182_v6, %v172_v15 }
 0x1d7   :  { %439 = vmatpush.msra.mxu2 %v189_v17  ;;  %459 = vmatpush.msra.mxu3 %v190_v18 }
 0x1da   :  { %v141_v26 = vpop.permute.xlu2 %140  ;;  %v164_v48 = vpop.permute.xlu0 %163 }
 0x1db   :  { %v137_v43 = vpop.permute.xlu1 %136  ;;  %v145_v28 = vsel %vm144_vm14, %v139_v13, %v141_v26  ;;  %v174_v3 = vsel %vm171_vm13, %v164_v48, %v1160_v23 }
 0x1dc   :  { %v146_v35 = vsel %vm144_vm14, %v137_v43, %v139_v13  ;;  %v162_v44 = vmul.f32 %v1521_v25, %v145_v28  ;;  %v175_v13 = vsel %vm171_vm13, %v170_v12, %v164_v48  ;;  %v188_v12 = vmul.f32 %v1519_v57, %v174_v3 }
 0x1dd   :  { %v161_v46 = vmul.f32 %v153_v50, %v146_v35  ;;  %v187_v23 = vmul.f32 %v1520_v40, %v175_v13 }
 0x1de   :  { %460 = vmatpush.msra.mxu3 %v162_v44 }
 0x1df   :  { %440 = vmatpush.msra.mxu2 %v161_v46  ;;  %780 = vmatmul.msk.f32.vlgmr.msra.gmra.mxu3 %vm381_vm15, %v374_v45 }
 0x1e0   :  { %779 = vmatmul.msk.f32.vlgmr.msra.gmra.mxu2 %vm381_vm15, %v374_v45 }
 0x1e3   :  { %v192_v53 = vpop.permute.xlu1 %191 }
 0x1e4   :  { %v202_v14 = vsel %vm199_vm12, %v192_v53, %v1129_v62  ;;  %v203_v15 = vsel %vm199_vm12, %v198_v41, %v192_v53  ;;  %v1518_v62 = vperm.slane %v1211_v24, 0  ;;  %v1517_v41 = vperm.slane %v1211_v24, 1 }
 0x1e5   :  { %v215_v11 = vmul.f32 %v1523_v49, %v203_v15  ;;  %v216_v17 = vmul.f32 %v1522_v52, %v202_v14 }
 0x1e7   :  { %398 = vmatpush.msra.mxu0 %v215_v11  ;;  %418 = vmatpush.msra.mxu1 %v216_v17 }
 0x1e9   :  { %399 = vmatpush.msra.mxu0 %v187_v23  ;;  %419 = vmatpush.msra.mxu1 %v188_v12 }
 0x1eb   :  { %v135_v18 = vpop.permute.xlu1 %134 }
 0x1ec   :  { %v147_v28 = vsel %vm144_vm14, %v135_v18, %v137_v43  ;;  %v148_v35 = vsel %vm144_vm14, %v141_v26, %v135_v18 }
 0x1ed   :  { %v159_v44 = vmul.f32 %v1518_v62, %v148_v35  ;;  %v160_v46 = vmul.f32 %v1517_v41, %v147_v28 }
 0x1ef   :  { %400 = vmatpush.msra.mxu0 %v159_v44  ;;  %420 = vmatpush.msra.mxu1 %v160_v46 }
 0x1f0   :  { %777 = vmatmul.msk.f32.vlgmr.msra.gmra.mxu0 %vm381_vm15, %v374_v45  ;;  %778 = vmatmul.msk.f32.vlgmr.msra.gmra.mxu1 %vm381_vm15, %v374_v45 }
 0x218   :  { %v379_v53 = vpop.permute.xlu2 %378 }
 0x262   :  { %v462_v3 = vpop.f32.mrf.mxu3 }
 0x263   :  { %v442_v48 = vpop.f32.mrf.mxu2  ;;  %v463_v11 = vadd.f32 %v462_v3, %v379_v53 }
 0x264   :  { %v443_v15 = vadd.f32 %v442_v48, %v379_v53 }
 0x265   :  { %v473_v46 = vmul.f32 %v463_v11, %v463_v11 }
 0x266   :  { %v472_v28 = vmul.f32 %v443_v15, %v443_v15 }
 0x26d   :  { %v422_v13 = vpop.f32.mrf.mxu1  ;;  %v402_v43 = vpop.f32.mrf.mxu0 }
 0x26e   :  { %v423_v14 = vadd.f32 %v422_v13, %v379_v53  ;;  %v403_v26 = vadd.f32 %v402_v43, %v379_v53 }
 0x270   :  { %v465_v17 = vadd.f32 %v423_v14, %v403_v26  ;;  %v470_v23 = vmul.f32 %v403_v26, %v403_v26  ;;  %v471_v12 = vmul.f32 %v423_v14, %v423_v14 }
 0x272   :  { %v466_v18 = vadd.f32 %v465_v17, %v443_v15  ;;  %v474_v35 = vadd.f32 %v471_v12, %v470_v23 }
 0x274   :  { %v467_v44 = vadd.f32 %v466_v18, %v463_v11  ;;  %v475_v41 = vadd.f32 %v474_v35, %v472_v28 }
 0x276   :  { %468 = vadd.xlane.f32.xlu0 %v467_v44  ;;  %v476_v45 = vadd.f32 %v475_v41, %v473_v46  ;;  %v483_v41 = vld [vmem:[%s1512_s6] sm:$0xff] }
 0x278   :  { %477 = vadd.xlane.f32.xlu1 %v476_v45 }
 0x2e9   :  { %v469_v62 = vpop.xlane.xlu0 %468 }
 0x2ea   :  { %v479_v57 = vmul.f32 0.001953125, %v469_v62 }
 0x2eb   :  { %v478_v40 = vpop.xlane.xlu1 %477 }
 0x2ec   :  { %v481_v25 = vmul.f32 %v479_v57, %v479_v57  ;;  %v480_v13 = vmul.f32 0.001953125, %v478_v40 }
 0x2ee   :  { %v482_v48 = vsub.f32 %v480_v13, %v481_v25  ;;  %v496_v25 = vld [vmem:[%s1513_s7] sm:$0xff] }
 0x2f0   :  { %v484_v43 = vadd.f32 1e-05, %v482_v48 }
 0x2f2   :  { %804 = vrsqrt.f32 %v484_v43  ;;  %vm491_vm1 = vweird.f32 %v484_v43 }
 0x2f8   :  { %v805_v53 = vpop.eup %804 }
 0x2f9   :  { %v486_v3 = vmul.f32 %v805_v53, %v484_v43  ;;  %vm492_vm0 = vweird.f32 %v805_v53 }
 0x2fa   :  { %vm493_vm2 = vmor %vm491_vm1, %vm492_vm0 }
 0x2fb   :  { %v487_v52 = vmul.f32 %v805_v53, %v486_v3 }
 0x2fd   :  { %v488_v17 = vmul.f32 0.5, %v487_v52 }
 0x2ff   :  { %v489_v49 = vsub.f32 1.5, %v488_v17 }
 0x301   :  { %v490_v23 = vmul.f32 %v805_v53, %v489_v49 }
 0x303   :  { %v494_v62 = vsel %vm493_vm2, %v805_v53, %v490_v23 }
 0x304   :  { %v495_v12 = vmul.f32 %v494_v62, %v483_v41 }
 0x306   :  { %501 = vperm.xlu2 %800, %v495_v12   ;;  %v497_v40 = vmul.f32 %v495_v12, %v479_v57 }
 0x308   :  { %v498_v18 = vsub.f32 %v496_v25, %v497_v40 }
 0x30e   :  { %510 = vperm.xlu2 %800, %v498_v18  }
 0x360   :  { %v502_v52 = vpop.permute.xlu2 %501 }
 0x361   :  { %v504_v28 = vmul.f32 %v502_v52, %v403_v26  ;;  %v507_v35 = vmul.f32 %v502_v52, %v463_v11  ;;  %v506_v13 = vmul.f32 %v502_v52, %v443_v15  ;;  %v505_v15 = vmul.f32 %v502_v52, %v423_v14  ;;  %v662_v14 = vld [vmem:[%s1515_s9] sm:$0xff] }
 0x368   :  { %v511_v44 = vpop.permute.xlu2 %510 }
 0x369   :  { %v513_v46 = vadd.f32 %v511_v44, %v504_v28  ;;  %v516_v45 = vadd.f32 %v511_v44, %v507_v35  ;;  %v515_v43 = vadd.f32 %v511_v44, %v506_v13  ;;  %v514_v3 = vadd.f32 %v511_v44, %v505_v15 }
 0x36b   :  { %vm517_vm3 = vcmp.gt.f32.partialorder %v513_v46, 0.0  ;;  %vm520_vm4 = vcmp.gt.f32.partialorder %v516_v45, 0.0  ;;  %v521_v49 = vmul.f32 0.1, %v513_v46  ;;  %v524_v48 = vmul.f32 0.1, %v516_v45 }
 0x36c   :  { %v523_v26 = vmul.f32 0.1, %v515_v43  ;;  %vm519_vm5 = vcmp.gt.f32.partialorder %v515_v43, 0.0  ;;  %v522_v17 = vmul.f32 0.1, %v514_v3  ;;  %vm518_vm6 = vcmp.gt.f32.partialorder %v514_v3, 0.0 }
 0x36d   :  { %v1269_v53 = vsel %vm517_vm3, %v513_v46, %v521_v49  ;;  %v1271_v57 = vsel %vm520_vm4, %v516_v45, %v524_v48 }
 0x36e   :  { %629 = vrot.lane.b32.xlu0 %v1269_v53, %s893_s2  ;;  %645 = vrot.lane.b32.xlu2 %v1269_v53, %s894_s3  ;;  %v1279_v11 = vsel %vm519_vm5, %v515_v43, %v523_v26  ;;  %v1287_v41 = vsel %vm518_vm6, %v514_v3, %v522_v17 }
 0x36f   :  { %635 = vrot.lane.b32.xlu1 %v1271_v57, %s893_s2  ;;  %v594_v34 = vmul.f32 %v1287_v41, %v251_v2 }
 0x376   :  { %619 = vrot.lane.b32.xlu0 %v1271_v57, %s896_s28  ;;  %649 = vrot.lane.b32.xlu2 %v1279_v11, %s894_s3 }
 0x377   :  { %603 = vrot.lane.b32.xlu1 %v1271_v57, %s895_s27 }
 0x37e   :  { %601 = vrot.lane.b32.xlu0 %v1279_v11, %s895_s27  ;;  %651 = vrot.lane.b32.xlu2 %v1271_v57, %s894_s3 }
 0x37f   :  { %579 = vrot.lane.b32.xlu1 %v1287_v41, %s897_s29 }
 0x386   :  { %631 = vrot.lane.b32.xlu0 %v1287_v41, %s893_s2  ;;  %633 = vrot.lane.b32.xlu2 %v1279_v11, %s893_s2 }
 0x387   :  { %615 = vrot.lane.b32.xlu1 %v1287_v41, %s896_s28 }
 0x38e   :  { %583 = vrot.lane.b32.xlu0 %v1271_v57, %s897_s29  ;;  %613 = vrot.lane.b32.xlu2 %v1269_v53, %s896_s28 }
 0x38f   :  { %567 = vrot.lane.b32.xlu1 %v1271_v57, %s898_s30 }
 0x396   :  { %565 = vrot.lane.b32.xlu0 %v1279_v11, %s898_s30  ;;  %617 = vrot.lane.b32.xlu2 %v1279_v11, %s896_s28 }
 0x397   :  { %549 = vrot.lane.b32.xlu1 %v1279_v11, %s899_s11 }
 0x39e   :  { %547 = vrot.lane.b32.xlu0 %v1287_v41, %s899_s11  ;;  %597 = vrot.lane.b32.xlu2 %v1269_v53, %s895_s27 }
 0x39f   :  { %533 = vrot.lane.b32.xlu1 %v1279_v11, %s900_s12 }
 0x3a6   :  { %531 = vrot.lane.b32.xlu0 %v1287_v41, %s900_s12  ;;  %647 = vrot.lane.b32.xlu2 %v1287_v41, %s894_s3 }
 0x3a7   :  { %561 = vrot.lane.b32.xlu1 %v1269_v53, %s898_s30 }
 0x3ae   :  { %577 = vrot.lane.b32.xlu0 %v1269_v53, %s897_s29  ;;  %581 = vrot.lane.b32.xlu2 %v1279_v11, %s897_s29 }
 0x3af   :  { %665 = vperm.xlu1 %799, %v662_v14  }
 0x3b6   :  { %529 = vrot.lane.b32.xlu0 %v1269_v53, %s900_s12  ;;  %563 = vrot.lane.b32.xlu2 %v1287_v41, %s898_s30 }
 0x3be   :  { %599 = vrot.lane.b32.xlu2 %v1287_v41, %s895_s27 }
 0x3c6   :  { %551 = vrot.lane.b32.xlu2 %v1271_v57, %s899_s11 }
 0x3c8   :  { %v646_v23 = vpop.permute.xlu2 %645 }
 0x3ce   :  { %535 = vrot.lane.b32.xlu2 %v1271_v57, %s900_s12 }
 0x3d0   :  { %v650_v62 = vpop.permute.xlu2 %649 }
 0x3d6   :  { %545 = vrot.lane.b32.xlu2 %v1269_v53, %s899_s11 }
 0x3d8   :  { %v652_v12 = vpop.permute.xlu2 %651 }
 0x3d9   :  { %v653_v40 = vsel %vm354_vm7, %v650_v62, %v652_v12  ;;  %v656_v25 = vsel %vm354_vm7, %v652_v12, %v646_v23  ;;  %v595_v12 = vmul.f32 %v1279_v11, %v252_v47 }
 0x3da   :  { %v659_v18 = vmul.f32 %v653_v40, %v364_v56  ;;  %v660_v52 = vmul.f32 %v656_v25, %v365_v60 }
 0x3dc   :  { %718 = vmatpush.msrb.mxu2 %v659_v18  ;;  %738 = vmatpush.msrb.mxu3 %v660_v52 }
 0x3e0   :  { %v630_v28 = vpop.permute.xlu0 %629  ;;  %v634_v35 = vpop.permute.xlu2 %633 }
 0x3e1   :  { %v636_v44 = vpop.permute.xlu1 %635 }
 0x3e2   :  { %v640_v46 = vsel %vm326_vm8, %v636_v44, %v630_v28  ;;  %v637_v45 = vsel %vm326_vm8, %v634_v35, %v636_v44 }
 0x3e3   :  { %v643_v13 = vmul.f32 %v637_v45, %v336_v1  ;;  %v644_v56 = vmul.f32 %v640_v46, %v337_v22 }
 0x3e5   :  { %719 = vmatpush.msrb.mxu2 %v643_v13  ;;  %739 = vmatpush.msrb.mxu3 %v644_v56 }
 0x3e8   :  { %v620_v60 = vpop.permute.xlu0 %619  ;;  %v614_v49 = vpop.permute.xlu2 %613 }
 0x3e9   :  { %v604_v48 = vpop.permute.xlu1 %603  ;;  %v624_v43 = vsel %vm298_vm9, %v620_v60, %v614_v49 }
 0x3ea   :  { %v628_v26 = vmul.f32 %v624_v43, %v309_v27 }
 0x3ec   :  { %740 = vmatpush.msrb.mxu3 %v628_v26 }
 0x3f0   :  { %v1364_v15 = vpop.permute.xlu0 %601  ;;  %v618_v3 = vpop.permute.xlu2 %617 }
 0x3f1   :  { %v1366_v17 = vpop.permute.xlu1 %579  ;;  %v605_v1 = vsel %vm270_vm10, %v1364_v15, %v604_v48  ;;  %v621_v22 = vsel %vm298_vm9, %v618_v3, %v620_v60 }
 0x3f2   :  { %v627_v14 = vmul.f32 %v621_v22, %v308_v10  ;;  %v611_v27 = vmul.f32 %v605_v1, %v280_v39  ;;  %v596_v10 = vmul.f32 %v1271_v57, %v253_v42 }
 0x3f4   :  { %720 = vmatpush.msrb.mxu2 %v627_v14 }
 0x3f6   :  { %721 = vmatpush.msrb.mxu2 %v611_v27 }
 0x3f8   :  { %v632_v40 = vpop.permute.xlu0 %631  ;;  %722 = vmatpush.msrb.mxu2 %v595_v12  ;;  %v598_v25 = vpop.permute.xlu2 %597 }
 0x3f9   :  { %v616_v18 = vpop.permute.xlu1 %615  ;;  %v608_v52 = vsel %vm270_vm10, %v604_v48, %v598_v25  ;;  %v638_v47 = vsel %vm326_vm8, %v632_v40, %v634_v35  ;;  %v639_v11 = vsel %vm326_vm8, %v630_v28, %v632_v40  ;;  %v661_v40 = vld [vmem:[%s1514_s8] sm:$0xff]  ;;  %s901_s8 = smov [#allocation7]  }
 0x3fa   :  { %v612_v44 = vmul.f32 %v608_v52, %v281_v61  ;;  %v622_v56 = vsel %vm298_vm9, %v616_v18, %v618_v3  ;;  %v623_v35 = vsel %vm298_vm9, %v614_v49, %v616_v18  ;;  %s764_s20 = sshll.u32 %s901_s8, 4  ;;  %s765_s20 = int_to_ptr.vmem [resolvable:$true] %s764_s20 }
 0x3fb   :  { %v625_v55 = vmul.f32 %v623_v35, %v306_v36  ;;  %v1529_v35 = vperm.slane %v1211_v24, 0 }
 0x3fc   :  { %741 = vmatpush.msrb.mxu3 %v612_v44 }
 0x3fe   :  { %742 = vmatpush.msrb.mxu3 %v596_v10  ;;  %v1525_v10 = vperm.slane %v1170_v29, 1 }
 0x400   :  { %v1387_v39 = vpop.permute.xlu0 %583  ;;  %v648_v46 = vpop.permute.xlu2 %647 }
 0x401   :  { %v568_v45 = vpop.permute.xlu1 %567  ;;  %v654_v13 = vsel %vm354_vm7, %v648_v46, %v650_v62  ;;  %v655_v61 = vsel %vm354_vm7, %v646_v23, %v648_v46  ;;  %v641_v62 = vmul.f32 %v639_v11, %v334_v21  ;;  %v642_v23 = vmul.f32 %v638_v47, %v335_v20 }
 0x402   :  { %v657_v42 = vmul.f32 %v655_v61, %v362_v8  ;;  %v658_v57 = vmul.f32 %v654_v13, %v363_v9  ;;  %v626_v8 = vmul.f32 %v622_v56, %v307_v37  ;;  %v1527_v61 = vperm.slane %v1194_v63, 0 }
 0x404   :  { %678 = vmatpush.msrb.mxu0 %v657_v42  ;;  %698 = vmatpush.msrb.mxu1 %v658_v57  ;;  %v1528_v57 = vperm.slane %v1194_v63, 1 }
 0x406   :  { %679 = vmatpush.msrb.mxu0 %v641_v62  ;;  %699 = vmatpush.msrb.mxu1 %v642_v23  ;;  %v1530_v23 = vperm.slane %v1211_v24, 1 }
 0x408   :  { %v566_v9 = vpop.permute.xlu0 %565  ;;  %680 = vmatpush.msrb.mxu0 %v625_v55  ;;  %700 = vmatpush.msrb.mxu1 %v626_v8  ;;  %v582_v28 = vpop.permute.xlu2 %581 }
 0x409   :  { %v550_v60 = vpop.permute.xlu1 %549  ;;  %v569_v49 = vsel %vm199_vm12, %v566_v9, %v568_v45  ;;  %v585_v0 = vsel %vm227_vm11, %v582_v28, %v1387_v39  ;;  %v586_v20 = vsel %vm227_vm11, %v1366_v17, %v582_v28  ;;  %v806_v28 = vld [vmem:[#allocation2 + $0x10] sm:$0xff] }
 0x40a   :  { %v591_v7 = vmul.f32 %v586_v20, %v237_v19  ;;  %v592_v21 = vmul.f32 %v585_v0, %v238_v51  ;;  %v576_v36 = vmul.f32 %v569_v49, %v210_v33  ;;  %v807_v0 = vld [vmem:[#allocation2 + $0x18] sm:$0xff] }
 0x40c   :  { %723 = vmatpush.msrb.mxu2 %v591_v7  ;;  %743 = vmatpush.msrb.mxu3 %v592_v21 }
 0x40e   :  { %744 = vmatpush.msrb.mxu3 %v576_v36 }
 0x410   :  { %v548_v37 = vpop.permute.xlu0 %547  ;;  %v564_v48 = vpop.permute.xlu2 %563 }
 0x411   :  { %v554_v43 = vsel %vm171_vm13, %v548_v37, %v550_v60  ;;  %v570_v26 = vsel %vm199_vm12, %v564_v48, %v566_v9  ;;  %v534_v3 = vpop.permute.xlu1 %533 }
 0x412   :  { %v575_v19 = vmul.f32 %v570_v26, %v209_v32  ;;  %v559_v51 = vmul.f32 %v554_v43, %v181_v4  ;;  %v809_v43 = vld [vmem:[#allocation2 + $0x8] sm:$0xff] }
 0x414   :  { %724 = vmatpush.msrb.mxu2 %v575_v19 }
 0x416   :  { %725 = vmatpush.msrb.mxu2 %v559_v51 }
 0x418   :  { %v532_v1 = vpop.permute.xlu0 %531  ;;  %v600_v33 = vpop.permute.xlu2 %599 }
 0x419   :  { %v538_v22 = vsel %vm144_vm14, %v532_v1, %v534_v3  ;;  %v606_v14 = vsel %vm270_vm10, %v600_v33, %v1364_v15  ;;  %v607_v27 = vsel %vm270_vm10, %v598_v25, %v600_v33  ;;  %v593_v15 = vmul.f32 %v1269_v53, %v250_v5  ;;  %v562_v25 = vpop.permute.xlu1 %561 }
 0x41a   :  { %v609_v32 = vmul.f32 %v607_v27, %v278_v59  ;;  %v610_v12 = vmul.f32 %v606_v14, %v279_v58  ;;  %v543_v4 = vmul.f32 %v538_v22, %v153_v50  ;;  %v571_v58 = vsel %vm199_vm12, %v562_v25, %v564_v48 }
 0x41b   :  { %v572_v18 = vsel %vm199_vm12, %v568_v45, %v562_v25 }
 0x41c   :  { %681 = vmatpush.msrb.mxu0 %v609_v32  ;;  %701 = vmatpush.msrb.mxu1 %v610_v12 }
 0x41d   :  { %726 = vmatpush.msrb.mxu2 %v543_v4 }
 0x41e   :  { %783 = vmatmul.msk.f32.vlgmr.msrb.gmra.mxu2 %vm381_vm15, %v661_v40  ;;  %682 = vmatpush.msrb.mxu0 %v593_v15 }
 0x41f   :  { %702 = vmatpush.msrb.mxu1 %v594_v34 }
 0x420   :  { %v578_v59 = vpop.permute.xlu0 %577  ;;  %v552_v50 = vpop.permute.xlu2 %551 }
 0x421   :  { %v587_v5 = vsel %vm227_vm11, %v578_v59, %v1366_v17  ;;  %v588_v38 = vsel %vm227_vm11, %v1387_v39, %v578_v59  ;;  %v553_v2 = vsel %vm171_vm13, %v550_v60, %v552_v50  ;;  %v1524_v17 = vperm.slane %v1170_v29, 0  ;;  %v666_v54 = vpop.permute.xlu1 %665 }
 0x422   :  { %v589_v53 = vmul.f32 %v588_v38, %v235_v30  ;;  %v590_v41 = vmul.f32 %v587_v5, %v236_v31  ;;  %v560_v52 = vmul.f32 %v553_v2, %v182_v6  ;;  %v574_v39 = vmul.f32 %v571_v58, %v1525_v10 }
 0x423   :  { %v573_v44 = vmul.f32 %v572_v18, %v1524_v17 }
 0x424   :  { %683 = vmatpush.msrb.mxu0 %v589_v53  ;;  %703 = vmatpush.msrb.mxu1 %v590_v41 }
 0x425   :  { %745 = vmatpush.msrb.mxu3 %v560_v52 }
 0x426   :  { %684 = vmatpush.msrb.mxu0 %v573_v44  ;;  %704 = vmatpush.msrb.mxu1 %v574_v39 }
 0x428   :  { %v536_v46 = vpop.permute.xlu2 %535  ;;  %v530_v6 = vpop.permute.xlu0 %529 }
 0x429   :  { %v537_v30 = vsel %vm144_vm14, %v534_v3, %v536_v46  ;;  %v539_v11 = vsel %vm144_vm14, %v530_v6, %v532_v1  ;;  %v540_v29 = vsel %vm144_vm14, %v536_v46, %v530_v6 }
 0x42a   :  { %v544_v31 = vmul.f32 %v537_v30, %v1526_v16  ;;  %v541_v62 = vmul.f32 %v540_v29, %v1529_v35  ;;  %v542_v55 = vmul.f32 %v539_v11, %v1530_v23 }
 0x42c   :  { %746 = vmatpush.msrb.mxu3 %v544_v31 }
 0x42d   :  { %784 = vmatmul.msk.f32.vlgmr.msrb.gmra.mxu3 %vm381_vm15, %v661_v40 }
 0x430   :  { %v546_v47 = vpop.permute.xlu2 %545 }
 0x431   :  { %v555_v45 = vsel %vm171_vm13, %v546_v47, %v548_v37  ;;  %v556_v13 = vsel %vm171_vm13, %v552_v50, %v546_v47  ;;  %v808_v37 = vld [vmem:[#allocation2] sm:$0xff] }
 0x432   :  { %v557_v42 = vmul.f32 %v556_v13, %v1527_v61  ;;  %v558_v56 = vmul.f32 %v555_v45, %v1528_v57 }
 0x434   :  { %685 = vmatpush.msrb.mxu0 %v557_v42  ;;  %705 = vmatpush.msrb.mxu1 %v558_v56 }
 0x436   :  { %686 = vmatpush.msrb.mxu0 %v541_v62  ;;  %706 = vmatpush.msrb.mxu1 %v542_v55 }
 0x437   :  { %781 = vmatmul.msk.f32.vlgmr.msrb.gmra.mxu0 %vm381_vm15, %v661_v40  ;;  %782 = vmatmul.msk.f32.vlgmr.msrb.gmra.mxu1 %vm381_vm15, %v661_v40 }
 0x4a1   :  { %v728_v8 = vpop.f32.mrf.mxu2 }
 0x4a2   :  { %v729_v9 = vadd.f32 %v728_v8, %v666_v54 }
 0x4a4   :  { %v753_v63 = vadd.f32 %v806_v28, %v729_v9 }
 0x4a6   :  { %757 = vst [vmem:[#allocation7 + $0x10] sm:$0xff] %v753_v63 }
 0x4b0   :  { %v748_v60 = vpop.f32.mrf.mxu3 }
 0x4b1   :  { %v749_v49 = vadd.f32 %v748_v60, %v666_v54 }
 0x4b3   :  { %v754_v20 = vadd.f32 %v807_v0, %v749_v49 }
 0x4b4   :  { %v688_v7 = vpop.f32.mrf.mxu0  ;;  %v708_v21 = vpop.f32.mrf.mxu1 }
 0x4b5   :  { %758 = vst [vmem:[#allocation7 + $0x18] sm:$0xff] %v754_v20  ;;  %v689_v24 = vadd.f32 %v688_v7, %v666_v54  ;;  %v709_v36 = vadd.f32 %v708_v21, %v666_v54 }
 0x4b7   :  { %v751_v48 = vadd.f32 %v808_v37, %v689_v24  ;;  %v752_v26 = vadd.f32 %v809_v43, %v709_v36 }
 0x4b9   :  { %755 = vst [vmem:[#allocation7] sm:$0xff] %v751_v48 }
 0x4ba   :  { %756 = vst [vmem:[#allocation7 + $0x8] sm:$0xff] %v752_v26 }
 0x4bb   :  { %769 = dma.vmem_to_hbm [thread:$0]  %s765_s20, 512, %s767_s23, [#allocation4]  }
 0x4bc   :  { %886 = dma.done.wait [#allocation4], 512  }
 0x4bd   :  { %887 = vsyncadd [#allocation4], 4294966784 }
 0x4be   :  { %774 = vsyncpa [#allocation3], 1 }
 0x4bf   :  { %775 = vsyncpa [#allocation6], 1 }
 0x4c0   :  { %776 = vsyncpa [#allocation4], 1 }

</bundles_post_ra>
